<compile_context>
chip_gen: v7x
topology: tpu7x:2x2x1
jax: 0.10.0
libtpu: 0.0.40
codegen_flags: <defaults>
</compile_context>

<pallas_src>
import jax
import jax.numpy as jnp
from jax.experimental import pallas as pl
from jax.experimental.pallas import tpu as pltpu


def _round_up(n, m):
    return ((n + m - 1) // m) * m


def tcn_net_kernel(x_ref, halo_ref, w0_ref, w1_ref, bconv_ref, wfc_ref, bfc_ref,
                   out_ref):
    # x_ref    : (I, tile_t)  current time-tile of x (native dtype)
    # halo_ref : (I, 128)     the 128-column block of x ending at this tile's start
    # w0/w1    : (H, I)       conv taps for the previous / current sample (f32)
    # bconv    : (H, 1)
    # wfc      : (O, H)
    # bfc      : (O, 1)
    # out      : (O, tile_t)
    f32 = jnp.float32

    # relu(ZeroPad(x)): ReLU is elementwise, so apply it to the tile and to the
    # halo column independently; the injected zero (tile 0) stays zero.
    x_cur = jnp.maximum(x_ref[...].astype(f32), 0.0)                 # (I, tile_t)

    halo_col = jnp.maximum(halo_ref[:, 127:128].astype(f32), 0.0)    # (I, 1)
    halo_col = jnp.where(pl.program_id(0) == 0,
                         jnp.zeros_like(halo_col), halo_col)         # causal left pad

    # Previous-sample tap: shift right by one lane within the tile, injecting
    # the previous tile's last column (or zero) at lane 0.
    x_prev = jnp.concatenate([halo_col, x_cur[:, :-1]], axis=1)      # (I, tile_t)

    # Causal k=2 dilation-1 Conv1d as two MXU matmuls with f32 accumulation,
    # followed by the layer ReLU.
    h = (jnp.dot(w0_ref[...], x_prev, preferred_element_type=f32)
         + jnp.dot(w1_ref[...], x_cur, preferred_element_type=f32)
         + bconv_ref[...])
    h = jnp.maximum(h, 0.0)

    # F.elu(h) with h >= 0 is exactly the identity -> dropped (perf review).

    # Final linear layer: (O, H) @ (H, tile_t), lane-dense output.
    y = jnp.dot(wfc_ref[...], h, preferred_element_type=f32) + bfc_ref[...]
    out_ref[...] = y.astype(out_ref.dtype)


def prepare_params(params):
    """Hoist per-model constant transforms out of the per-call path."""
    w_conv, b_conv, w_fc, b_fc = params
    # Conv1d weight is (H, I, K=2): tap 0 multiplies the previous (shifted-in)
    # sample, tap 1 the current sample.
    w0 = w_conv[:, :, 0]
    w1 = w_conv[:, :, 1]
    return (w0, w1, b_conv[:, None], w_fc, b_fc[:, None])


def _choose_tile_t(T, max_tile_t):
    t128 = _round_up(T, 128)
    tile_t = min(_round_up(max_tile_t, 128), t128)
    # Keep >= 2 tiles whenever T allows it so the "parallel" grid axis can be
    # sharded across v7x's two TensorCores (no effect on single-TC v5e/v6e).
    if t128 >= 256 and tile_t >= t128:
        tile_t = _round_up(t128 // 2, 128)
    return tile_t


def tcn_net_forward(x, prepared, *, max_tile_t=4096):
    """x: (input_size, T) float -> (output_size, T) in x.dtype."""
    w0, w1, b_conv2, w_fc, b_fc2 = prepared
    I, T = x.shape
    O, H = w_fc.shape

    tile_t = _choose_tile_t(T, max_tile_t)
    n_tiles = pl.cdiv(T, tile_t)
    blocks_per_tile = tile_t // 128   # halo block size is 128 lanes

    return pl.pallas_call(
        tcn_net_kernel,
        out_shape=jax.ShapeDtypeStruct((O, T), x.dtype),
        grid=(n_tiles,),
        in_specs=[
            # Current x tile, streamed once per grid step.
            pl.BlockSpec((I, tile_t), lambda i: (0, i)),
            # Halo: the 128-column block of x ending at this tile's first
            # column (clamped to block 0 for the first tile; zero-selected in
            # the kernel).  Tiny extra DMA, avoids any wrapper-side shift.
            pl.BlockSpec((I, 128),
                         lambda i: (0, jnp.maximum(i * blocks_per_tile - 1, 0))),
            # Resident weights / biases (constant index maps).
            pl.BlockSpec((H, I), lambda i: (0, 0)),
            pl.BlockSpec((H, I), lambda i: (0, 0)),
            pl.BlockSpec((H, 1), lambda i: (0, 0)),
            pl.BlockSpec((O, H), lambda i: (0, 0)),
            pl.BlockSpec((O, 1), lambda i: (0, 0)),
        ],
        out_specs=pl.BlockSpec((O, tile_t), lambda i: (0, i)),
        compiler_params=pltpu.CompilerParams(
            dimension_semantics=("parallel",)),
    )(x, x, w0, w1, b_conv2, w_fc, b_fc2)


def init_params(key, input_size, hidden_size, output_size, kernel_size=2):
    """Deterministic synthetic parameters (PyTorch-style uniform init)."""
    ks = jax.random.split(key, 4)
    u = lambda kk, shape, lim: jax.random.uniform(
        kk, shape, minval=-lim, maxval=lim, dtype=jnp.float32)
    k_conv = 1.0 / jnp.sqrt(jnp.float32(input_size * kernel_size))
    k_fc = 1.0 / jnp.sqrt(jnp.float32(hidden_size))
    w_conv = u(ks[0], (hidden_size, input_size, kernel_size), k_conv)   # Conv1d.weight
    b_conv = u(ks[1], (hidden_size,), k_conv)                           # Conv1d.bias
    w_fc = u(ks[2], (output_size, hidden_size), k_fc)                   # Linear.weight
    b_fc = u(ks[3], (output_size,), k_fc)                               # Linear.bias
    return (w_conv, b_conv, w_fc, b_fc)


def tcn_net_reference(x, params):
    """Pure-JAX reference mirroring the PyTorch forward (for self-check)."""
    w_conv, b_conv, w_fc, b_fc = params
    padded = jnp.pad(x, ((0, 0), (1, 0)))                  # (I, T+1)
    padded = jnp.maximum(padded, 0.0)                      # relu(pad(x))
    h = (w_conv[:, :, 0] @ padded[:, :-1]
         + w_conv[:, :, 1] @ padded[:, 1:]
         + b_conv[:, None])                                # (H, T)
    h = jnp.maximum(h, 0.0)                                # relu(conv(...))
    e = jnp.where(h > 0, h, jnp.expm1(h))                  # F.elu (identity here)
    y = w_fc @ e + b_fc[:, None]                           # fc1
    return y                                               # (O, T)


if __name__ == "__main__":
    input_size, hidden_size, output_size = 4, 32, 4

    key = jax.random.PRNGKey(0)
    k_x1, k_x2, k_p = jax.random.split(key, 3)
    params = init_params(k_p, input_size, hidden_size, output_size)
    prepared = prepare_params(params)

    # Case 1: tiny single-tile sequence.  Case 2: multi-tile ragged sequence
    # that exercises the cross-tile halo path and the masked partial last tile.
    for k_x, T in ((k_x1, 16), (k_x2, 300)):
        x = jax.random.normal(k_x, (input_size, T), dtype=jnp.float32)
        out = jax.block_until_ready(tcn_net_forward(x, prepared))
        ref = tcn_net_reference(x, params)
        assert out.shape == (output_size, T)
        assert jnp.allclose(out, ref, atol=1e-5, rtol=1e-5), f"mismatch at T={T}"

    print("KERNEL_OK")
</pallas_src>

<mosaic_0001>
module attributes {stable_mosaic.version = 11 : i64} {
  func.func @tcn_net_kernel(%arg0: i32, %arg1: memref<4x128xf32, #tpu.memory_space<vmem>>, %arg2: memref<4x128xf32, #tpu.memory_space<vmem>>, %arg3: memref<32x4xf32, #tpu.memory_space<vmem>>, %arg4: memref<32x4xf32, #tpu.memory_space<vmem>>, %arg5: memref<32x1xf32, #tpu.memory_space<vmem>>, %arg6: memref<4x32xf32, #tpu.memory_space<vmem>>, %arg7: memref<4x1xf32, #tpu.memory_space<vmem>>, %arg8: memref<4x128xf32, #tpu.memory_space<vmem>>) attributes {dimension_semantics = [#tpu.dimension_semantics<parallel>], iteration_bounds = array<i64: 1>, scalar_prefetch = 0 : i64, scratch_operands = 0 : i64, tpu.core_type = #tpu.core_type<tc>, window_params = [{transform_indices = @transform_0, window_bounds = array<i64: 4, 128>}, {transform_indices = @transform_1, window_bounds = array<i64: 4, 128>}, {pipeline_mode = #tpu.pipeline_mode<synchronous>, transform_indices = @transform_2, window_bounds = array<i64: 32, 4>}, {pipeline_mode = #tpu.pipeline_mode<synchronous>, transform_indices = @transform_3, window_bounds = array<i64: 32, 4>}, {pipeline_mode = #tpu.pipeline_mode<synchronous>, transform_indices = @transform_4, window_bounds = array<i64: 32, 1>}, {pipeline_mode = #tpu.pipeline_mode<synchronous>, transform_indices = @transform_5, window_bounds = array<i64: 4, 32>}, {pipeline_mode = #tpu.pipeline_mode<synchronous>, transform_indices = @transform_6, window_bounds = array<i64: 4, 1>}, {transform_indices = @transform_7, window_bounds = array<i64: 4, 128>}]} {
    %c0 = arith.constant 0 : index
    %c0_0 = arith.constant 0 : index
    %0 = vector.load %arg1[%c0, %c0_0] : memref<4x128xf32, #tpu.memory_space<vmem>>, vector<4x128xf32>
    %cst = arith.constant 0.000000e+00 : f32
    %1 = vector.broadcast %cst : f32 to vector<4x128xf32>
    %2 = arith.maximumf %0, %1 : vector<4x128xf32>
    %c0_1 = arith.constant 0 : index
    %c127 = arith.constant 127 : index
    %3 = vector.load %arg2[%c0_1, %c127] : memref<4x128xf32, #tpu.memory_space<vmem>>, vector<4x1xf32>
    %cst_2 = arith.constant 0.000000e+00 : f32
    %4 = vector.broadcast %cst_2 : f32 to vector<4x1xf32>
    %5 = arith.maximumf %3, %4 : vector<4x1xf32>
    %c0_i32 = arith.constant 0 : i32
    %6 = arith.cmpi eq, %arg0, %c0_i32 : i32
    %cst_3 = arith.constant 0.000000e+00 : f32
    %7 = vector.broadcast %cst_3 : f32 to vector<4x1xf32>
    %8 = arith.select %6, %7, %5 : vector<4x1xf32>
    %9 = vector.extract_strided_slice %2 {offsets = [0, 0], sizes = [4, 127], strides = [1, 1]} : vector<4x128xf32> to vector<4x127xf32>
    %10 = tpu.concatenate %8, %9 in 1 : vector<4x1xf32>, vector<4x127xf32> -> vector<4x128xf32>
    %c0_4 = arith.constant 0 : index
    %c0_5 = arith.constant 0 : index
    %11 = vector.load %arg3[%c0_4, %c0_5] : memref<32x4xf32, #tpu.memory_space<vmem>>, vector<32x4xf32>
    %cst_6 = arith.constant dense<0.000000e+00> : vector<32x128xf32>
    %12 = tpu.matmul %11, %10, %cst_6 {dimension_numbers = #tpu.dot_dimension_numbers<[1], [0], [0], [1], [0, 0, 1, 1], [], []>} : vector<32x4xf32>, vector<4x128xf32>, vector<32x128xf32> -> vector<32x128xf32>
    %c0_7 = arith.constant 0 : index
    %c0_8 = arith.constant 0 : index
    %13 = vector.load %arg4[%c0_7, %c0_8] : memref<32x4xf32, #tpu.memory_space<vmem>>, vector<32x4xf32>
    %cst_9 = arith.constant dense<0.000000e+00> : vector<32x128xf32>
    %14 = tpu.matmul %13, %2, %cst_9 {dimension_numbers = #tpu.dot_dimension_numbers<[1], [0], [0], [1], [0, 0, 1, 1], [], []>} : vector<32x4xf32>, vector<4x128xf32>, vector<32x128xf32> -> vector<32x128xf32>
    %15 = arith.addf %12, %14 : vector<32x128xf32>
    %c0_10 = arith.constant 0 : index
    %c0_11 = arith.constant 0 : index
    %16 = vector.load %arg5[%c0_10, %c0_11] : memref<32x1xf32, #tpu.memory_space<vmem>>, vector<32x1xf32>
    %17 = vector.broadcast %16 : vector<32x1xf32> to vector<32x128xf32>
    %18 = arith.addf %15, %17 : vector<32x128xf32>
    %cst_12 = arith.constant 0.000000e+00 : f32
    %19 = vector.broadcast %cst_12 : f32 to vector<32x128xf32>
    %20 = arith.maximumf %18, %19 : vector<32x128xf32>
    %c0_13 = arith.constant 0 : index
    %c0_14 = arith.constant 0 : index
    %21 = vector.load %arg6[%c0_13, %c0_14] : memref<4x32xf32, #tpu.memory_space<vmem>>, vector<4x32xf32>
    %cst_15 = arith.constant dense<0.000000e+00> : vector<4x128xf32>
    %22 = tpu.matmul %21, %20, %cst_15 {dimension_numbers = #tpu.dot_dimension_numbers<[1], [0], [0], [1], [0, 0, 1, 1], [], []>} : vector<4x32xf32>, vector<32x128xf32>, vector<4x128xf32> -> vector<4x128xf32>
    %c0_16 = arith.constant 0 : index
    %c0_17 = arith.constant 0 : index
    %23 = vector.load %arg7[%c0_16, %c0_17] : memref<4x1xf32, #tpu.memory_space<vmem>>, vector<4x1xf32>
    %24 = vector.broadcast %23 : vector<4x1xf32> to vector<4x128xf32>
    %25 = arith.addf %22, %24 : vector<4x128xf32>
    %c0_18 = arith.constant 0 : index
    %c0_19 = arith.constant 0 : index
    %26 = vector.load %arg8[%c0_18, %c0_19] : memref<4x128xf32, #tpu.memory_space<vmem>>, vector<4x128xf32>
    tpu.vector_store %arg8[%c0_18, %c0_19], %25 {strides = array<i32>} : memref<4x128xf32, #tpu.memory_space<vmem>>, vector<4x128xf32>,
    return
  }
  func.func @transform_0(%arg0: i32) -> (i32, i32) {
    %c0_i32 = arith.constant 0 : i32
    %c0_i32_0 = arith.constant 0 : i32
    return %c0_i32, %arg0 : i32, i32
  }
  func.func @transform_1(%arg0: i32) -> (i32, i32) {
    %c1_i32 = arith.constant 1 : i32
    %0 = arith.muli %arg0, %c1_i32 : i32
    %c1_i32_0 = arith.constant 1 : i32
    %1 = arith.subi %0, %c1_i32_0 : i32
    %c0_i32 = arith.constant 0 : i32
    %2 = arith.maxsi %1, %c0_i32 : i32
    %c0_i32_1 = arith.constant 0 : i32
    %c0_i32_2 = arith.constant 0 : i32
    return %c0_i32_1, %2 : i32, i32
  }
  func.func @transform_2(%arg0: i32) -> (i32, i32) {
    %c0_i32 = arith.constant 0 : i32
    %c0_i32_0 = arith.constant 0 : i32
    %c0_i32_1 = arith.constant 0 : i32
    return %c0_i32, %c0_i32_0 : i32, i32
  }
  func.func @transform_3(%arg0: i32) -> (i32, i32) {
    %c0_i32 = arith.constant 0 : i32
    %c0_i32_0 = arith.constant 0 : i32
    %c0_i32_1 = arith.constant 0 : i32
    return %c0_i32, %c0_i32_0 : i32, i32
  }
  func.func @transform_4(%arg0: i32) -> (i32, i32) {
    %c0_i32 = arith.constant 0 : i32
    %c0_i32_0 = arith.constant 0 : i32
    %c0_i32_1 = arith.constant 0 : i32
    return %c0_i32, %c0_i32_0 : i32, i32
  }
  func.func @transform_5(%arg0: i32) -> (i32, i32) {
    %c0_i32 = arith.constant 0 : i32
    %c0_i32_0 = arith.constant 0 : i32
    %c0_i32_1 = arith.constant 0 : i32
    return %c0_i32, %c0_i32_0 : i32, i32
  }
  func.func @transform_6(%arg0: i32) -> (i32, i32) {
    %c0_i32 = arith.constant 0 : i32
    %c0_i32_0 = arith.constant 0 : i32
    %c0_i32_1 = arith.constant 0 : i32
    return %c0_i32, %c0_i32_0 : i32, i32
  }
  func.func @transform_7(%arg0: i32) -> (i32, i32) {
    %c0_i32 = arith.constant 0 : i32
    %c0_i32_0 = arith.constant 0 : i32
    return %c0_i32, %arg0 : i32, i32
  }
}

</mosaic_0001>

<bundles_post_ra>
// kernel: tpu_custom_call.1
= control target key start
LH: loop header
LB: loop body
LE: loop exit
PB: predicated region body
PF: predicated region fallthrough
CT: control target
= control target key end

     0   :  { %vm94_vm0 = vcmask 1043456   ;;  %v511_v2 = vmov 0.0   ;;  %s512_s27 = smov 1   ;;  %vm81_vm1 = vcmask 31744   ;;  %v513_v7 = vmov 0   ;;  %s626_s0 = inlined_call_operand.vmem [shape: f32[4,16], index: 0, kind: input, shape index: {}]   ;;  %s627_s1 = inlined_call_operand.vmem [shape: f32[4,16], index: 1, kind: input, shape index: {}]   ;;  %s628_s2 = inlined_call_operand.vmem [shape: f32[32,4], index: 2, kind: input, shape index: {}]   ;;  %s629_s3 = inlined_call_operand.vmem [shape: f32[32,4], index: 3, kind: input, shape index: {}]   ;;  %s630_s4 = inlined_call_operand.vmem [shape: f32[32,1], index: 4, kind: input, shape index: {}]   ;;  %s631_s5 = inlined_call_operand.vmem [shape: f32[4,32], index: 5, kind: input, shape index: {}]   ;;  %s632_s6 = inlined_call_operand.vmem [shape: f32[4,1], index: 6, kind: input, shape index: {}]   ;;  %s633_s7 = inlined_call_operand.hbm [shape: f32[4,16], index: 7, kind: output, shape index: {}]  }
   0x1   :  { %v54_v0 = vld [vmem:[%s626_s0] sm:$0xf]  ;;  %64 = vrot.lane.b32.xlu0 %v511_v2, %s512_s27  ;;  %v78_v5 = vld [vmem:[%s629_s3 + $0x8] sm:$0xff]  ;;  %v79_v6 = vld [vmem:[%s629_s3 + $0x10] sm:$0xff]  ;;  %485 = vset.pattern.permute.xlu1 %v513_v7 }
   0x2   :  { %v77_v1 = vld [vmem:[%s629_s3] sm:$0xff]  ;;  %v55_v3 = vmax.f32 %v54_v0, 0.0  ;;  %v283_v9 = vld [vmem:[%s630_s4 + $0x8] sm:$0xff] }
   0x3   :  { %v73_v4 = vld [vmem:[%s628_s2] sm:$0xff]  ;;  %444 = vmatprep.mubr.msk.f32.mxu1 %vm81_vm1, %v77_v1 }
   0x4   :  { %452 = vmatprep.mubr.msk.f32.mxu0 %vm81_vm1, %v73_v4  ;;  %442 = vmatprep.subr.msk.mxu1 %vm94_vm0, %v55_v3  ;;  %v282_v8 = vld [vmem:[%s630_s4] sm:$0xff] }
   0x5   :  { %443 = vmatpush3.msk.msra.mxu1 %vm94_vm0, %v55_v3  ;;  %288 = vperm.xlu1 %485, %v282_v8  }
   0x6   :  { %68 = vrot.lane.b32.xlu0 %v55_v3, %s512_s27  ;;  %445 = vmatmul.mubr.msk.f32.vlgmr.msra.gmra.mrb[0].mxu1 %vm81_vm1, %v78_v5 }
   0x7   :  { %12 = vsyncpa [#allocation3], 0  ;;  %447 = vmatprep.mubr.msk.f32.mxu1 %vm81_vm1, %v79_v6  ;;  %v80_v10 = vld [vmem:[%s629_s3 + $0x18] sm:$0xff]  ;;  %486 = vset.pattern.permute.xlu0 %v513_v7  ;;  %v284_v11 = vld [vmem:[%s630_s4 + $0x10] sm:$0xff]  ;;  %vm71_vm2 = vcmask 7168   ;;  %v514_v20 = vmov 0.0|0.0  }
   0x8   :  { %v285_v12 = vld [vmem:[%s630_s4 + $0x18] sm:$0xff]  ;;  %v315_v13 = vld [vmem:[%s632_s6] sm:$0xf]  ;;  %v74_v17 = vld [vmem:[%s628_s2 + $0x8] sm:$0xff]  ;;  %469 = vmatprep.subr.bf16.mxu1 %v514_v20  ;;  %vm515_vm3 = vmmov 0   ;;  %vm321_vm4 = vcmask 261120  }
   0x9   :  { %293 = vperm.xlu1 %485, %v283_v9   ;;  %v75_v18 = vld [vmem:[%s628_s2 + $0x10] sm:$0xff]  ;;  %v76_v19 = vld [vmem:[%s628_s2 + $0x18] sm:$0xff]  ;;  %v314_v47 = vld [vmem:[%s631_s5] sm:$0xf]  ;;  %s516_s25 = smov [#allocation2]  }
   0xa   :  { %448 = vmatmul.mubr.msk.f32.gmra.mrb[2].mxu1 %vm81_vm1, %v80_v10  ;;  %298 = vperm.xlu0 %486, %v284_v11   ;;  %s402_s26 = sshll.u32 %s516_s25, 4  ;;  %s403_s26 = int_to_ptr.vmem [resolvable:$true] %s402_s26 }
   0xb   :  { %466 = vmatprep.mubr.msk.f32.mxu1 %vm515_vm3, %v511_v2  ;;  %s487_s27 = scalar_lea.vmem %s403_s26, 64  ;;  %p492_p1 = scmp.lt.s32.totalorder %s403_s26, %s403_s26 }
   0xc   :  { %p488_p0 = scmp.ne.s32.totalorder %s403_s26, %s487_s27  ;;  %p493_p2 = scmp.lt.s32.totalorder %s487_s27, %s487_s27 }
   0xd   :  { %303 = vperm.xlu1 %485, %v285_v12  }
   0xe   :  { %p494_p3 = por %p493_p2, %p492_p1 }
  0x10   :  { %p495_p4 = pnand %p494_p3, %p488_p0 }
  0x11   :  { %318 = vperm.xlu1 %485, %v315_v13  }
  0x73   :  { %v65_v14 = vpop.permute.xlu0 %64 }
  0x78   :  { %v69_v15 = vpop.permute.xlu0 %68 }
  0x79   :  { %v72_v16 = vsel %vm71_vm2, %v65_v14, %v69_v15 }
  0x7a   :  { %450 = vmatprep.subr.msk.mxu0 %vm94_vm0, %v72_v16 }
  0x7b   :  { %451 = vmatpush3.msk.msra.mxu0 %vm94_vm0, %v72_v16 }
  0x7c   :  { %453 = vmatmul.mubr.msk.f32.vlgmr.msra.gmra.mrb[0].mxu0 %vm81_vm1, %v74_v17 }
  0x7d   :  { %455 = vmatprep.mubr.msk.f32.mxu0 %vm81_vm1, %v75_v18 }
  0x80   :  { %456 = vmatmul.mubr.msk.f32.gmra.mrb[2].mxu0 %vm81_vm1, %v76_v19 }
  0x84   :  { %v289_v25 = vpop.permute.xlu1 %288 }
  0x88   :  { %v294_v26 = vpop.permute.xlu1 %293 }
  0x89   :  { %v299_v37 = vpop.permute.xlu0 %298 }
  0x8c   :  { %v304_v38 = vpop.permute.xlu1 %303 }
  0x90   :  { %v319_v48 = vpop.permute.xlu1 %318 }
  0xd9   :  { %v446_v21 = vpop.f32.mrb[0].mxu1 }
  0xda   :  { %v163_v22 = vpop.f32.mrb[1].mxu1 }
  0xdd   :  { %v449_v23 = vpop.f32.mrb[2].mxu1 }
  0xde   :  { %v173_v24 = vpop.f32.mrb[3].mxu1 }
 0x14f   :  { %v454_v27 = vpop.f32.mrb[0].mxu0 }
 0x150   :  { %v269_v28 = vadd.f32 %v454_v27, %v446_v21  ;;  %v263_v29 = vpop.f32.mrb[1].mxu0 }
 0x151   :  { %v264_v30 = vadd.f32 %v263_v29, %v163_v22 }
 0x152   :  { %v307_v31 = vadd.f32 %v294_v26, %v269_v28 }
 0x153   :  { %v306_v32 = vadd.f32 %v289_v25, %v264_v30  ;;  %v457_v33 = vpop.f32.mrb[2].mxu0 }
 0x154   :  { %v311_v34 = vmax.f32 %v307_v31, 0.0  ;;  %v279_v35 = vadd.f32 %v457_v33, %v449_v23  ;;  %v273_v36 = vpop.f32.mrb[3].mxu0 }
 0x155   :  { %v310_v39 = vmax.f32 %v306_v32, 0.0  ;;  %v274_v40 = vadd.f32 %v273_v36, %v173_v24 }
 0x156   :  { %v309_v41 = vadd.f32 %v304_v38, %v279_v35 }
 0x157   :  { %v470_v42 = vpack.c.bf16 %v311_v34, %v310_v39  ;;  %v308_v43 = vadd.f32 %v299_v37, %v274_v40 }
 0x158   :  { %v313_v44 = vmax.f32 %v309_v41, 0.0 }
 0x159   :  { %v312_v45 = vmax.f32 %v308_v43, 0.0  ;;  %471 = vmatpush3.bf16.msra.mxu1 %v470_v42 }
 0x15a   :  { %472 = vmatprep.subr.bf16.mxu1 %v514_v20 }
 0x15b   :  { %v473_v46 = vpack.c.bf16 %v313_v44, %v312_v45 }
 0x15d   :  { %474 = vmatpush3.bf16.msra.mxu1 %v473_v46 }
 0x160   :  { %467 = vmatmul.mubr.msk.f32.vlgmr.msra.gmra.mrb[4].mxu1 %vm321_vm4, %v314_v47 }
 0x233   :  { %v391_v49 = vpop.f32.mrb[4].mxu1 }
 0x234   :  { %v392_v50 = vadd.f32 %v391_v49, %v319_v48  ;;  %v468_v51 = vpop.f32.mrb[5].mxu1 }
 0x236   :  { %395 = vst [vmem:[#allocation2] sm:$0xf] %v392_v50 }
 0x237   :  { %498 = shalt.err (!%p495_p4)
}
 0x238   :  { %s499_s5 = scalar_lea.hbm %s633_s7, 64 }
 0x239   :  { %p500_p5 = scmp.ne.s32.totalorder %s633_s7, %s499_s5  ;;  %p503_p6 = scmp.lt.u32.totalorder %s499_s5, %s633_s7 }
 0x23b   :  { %p505_p7 = pnand %p503_p6, %p500_p5 }
 0x23d   :  { %508 = shalt.err (!%p505_p7)
}
 0x23e   :  { %405 = dma.vmem_to_hbm [thread:$0]  %s403_s26, 64, %s633_s7, [#allocation3]  }
 0x23f   :  { %509 = dma.done.wait [#allocation3], 64  }
 0x240   :  { %510 = vsyncadd [#allocation3], 4294967232 }
 0x241   :  { %409 = vsyncpa [#allocation3], 1 }

</bundles_post_ra>
